<compile_context>
chip_gen: v7x
topology: tpu7x:2x2x1
jax: 0.10.0
libtpu: 0.0.40
codegen_flags: <defaults>
</compile_context>

<pallas_src>
import functools
import math

import jax
import jax.numpy as jnp
from jax.experimental import pallas as pl
from jax.experimental.pallas import tpu as pltpu

LANE = 128
SUBLANE = 8


def _round_up(x, m):
    return ((x + m - 1) // m) * m


def _pad2d(x, rows, cols):
    r, c = x.shape
    return jnp.pad(x, ((0, rows - r), (0, cols - c)))


def _tpu_vmem_capacity_bytes():
    try:
        return int(pltpu.get_tpu_info().vmem_capacity_bytes)
    except Exception:
        return 64 << 20  # conservative fallback (v7x: 64 MiB per TensorCore)


def _generation_config():
    cap = _tpu_vmem_capacity_bytes()
    if cap >= (96 << 20):
        # v5e / v6e: 128 MiB physical VMEM -> big tiles, ~100 MiB scoped cap
        return dict(vmem_cap=100 << 20, row_tile=512, k_tile=2048, pool_tile=2048)
    # v7x: 64 MiB per TensorCore -> smaller tiles, leave Mosaic headroom
    return dict(vmem_cap=56 << 20, row_tile=256, k_tile=1024, pool_tile=1024)


def _clamp_tile(req, np0):
    """Shrink a 128*2^k tile request so it is <= np0 (keeps lcm == max tile)."""
    t = req
    while t > np0:
        t //= 2
    return max(t, LANE)


def _vmem_limit(need_bytes, cap):
    return int(min(max(2 * need_bytes, 32 << 20), cap))


# ----------------------------- kernels ---------------------------------------


def feature_project_kernel(h_ref, w_ref, o_ref):
    """One node-row tile of H @ W (f32 accumulate, single bf16 rounding)."""
    o_ref[...] = jnp.dot(h_ref[...], w_ref[...],
                         preferred_element_type=jnp.float32).astype(o_ref.dtype)


def gcn_aggregate_kernel(a_ref, hw_ref, b_ref, o_ref, acc_ref):
    """(row, k) tile of relu(A @ HW + b): a single MXU dot per grid step.

    a_ref  : (tm, tk)   bf16  A_hat block
    hw_ref : (tk, Fout) bf16  projected-feature block
    b_ref  : (1, Fout)  f32   layer bias
    o_ref  : (tm, Fout) bf16  output node-feature tile (written on last k)
    acc_ref: (tm, Fout) f32   accumulator scratch
    """
    k = pl.program_id(1)

    @pl.when(k == 0)
    def _():
        acc_ref[...] = jnp.zeros_like(acc_ref)

    acc_ref[...] += jnp.dot(a_ref[...], hw_ref[...],
                            preferred_element_type=jnp.float32)

    @pl.when(k == pl.num_programs(1) - 1)
    def _():
        o_ref[...] = jnp.maximum(acc_ref[...] + b_ref[...], 0.0).astype(o_ref.dtype)


def pool_head_kernel(p_ref, h_ref, w_ref, b_ref, o_ref, acc_ref, *, num_classes):
    """Node-tiled global mean pool; head + exact softmax on the last tile."""
    k = pl.program_id(0)

    @pl.when(k == 0)
    def _():
        acc_ref[...] = jnp.zeros_like(acc_ref)

    acc_ref[...] += jnp.dot(p_ref[...], h_ref[...],
                            preferred_element_type=jnp.float32)

    @pl.when(k == pl.num_programs(0) - 1)
    def _():
        logits = jnp.dot(acc_ref[...].astype(jnp.bfloat16), w_ref[...],
                         preferred_element_type=jnp.float32) + b_ref[...]
        col = jax.lax.broadcasted_iota(jnp.int32, logits.shape, 1)
        logits = jnp.where(col < num_classes, logits, -1e30)
        m = jnp.max(logits, axis=-1, keepdims=True)
        e = jnp.exp(logits - m)
        o_ref[...] = e / jnp.sum(e, axis=-1, keepdims=True)  # exact normalization


def fused_forward_kernel(a_ref, x_ref, w1_ref, b1_ref, w2_ref, b2_ref,
                         p_ref, w3_ref, b3_ref, o_ref, *, num_classes):
    """Whole forward in one launch when the padded A fits VMEM.

    A is brought into VMEM once (it is the dominant HBM stream) and reused by
    both GCN layers; each layer is relu(A @ (H W) + b) with a single bf16
    rounding of the projected features.
    """
    a = a_ref[...]
    xw1 = jnp.dot(x_ref[...], w1_ref[...], preferred_element_type=jnp.float32)
    h1 = jnp.maximum(
        jnp.dot(a, xw1.astype(jnp.bfloat16), preferred_element_type=jnp.float32)
        + b1_ref[...], 0.0)
    hw2 = jnp.dot(h1.astype(jnp.bfloat16), w2_ref[...],
                  preferred_element_type=jnp.float32)
    h2 = jnp.maximum(
        jnp.dot(a, hw2.astype(jnp.bfloat16), preferred_element_type=jnp.float32)
        + b2_ref[...], 0.0)
    g = jnp.dot(p_ref[...], h2.astype(jnp.bfloat16),
                preferred_element_type=jnp.float32)
    logits = jnp.dot(g.astype(jnp.bfloat16), w3_ref[...],
                     preferred_element_type=jnp.float32) + b3_ref[...]
    col = jax.lax.broadcasted_iota(jnp.int32, logits.shape, 1)
    logits = jnp.where(col < num_classes, logits, -1e30)
    m = jnp.max(logits, axis=-1, keepdims=True)
    e = jnp.exp(logits - m)
    o_ref[...] = e / jnp.sum(e, axis=-1, keepdims=True)


# ----------------------------- wrappers ---------------------------------------


def feature_project(h_bf16, w_bf16, *, row_tile, vmem_cap):
    np_, fin = h_bf16.shape
    fout = w_bf16.shape[1]
    grid = (np_ // row_tile,)
    need = (2 * row_tile * fin * 2 + 2 * fin * fout * 2 + 2 * row_tile * fout * 2)
    cost = pl.CostEstimate(
        flops=2 * np_ * fin * fout, transcendentals=0,
        bytes_accessed=int(2 * (h_bf16.size + w_bf16.size + np_ * fout)))
    return pl.pallas_call(
        feature_project_kernel,
        out_shape=jax.ShapeDtypeStruct((np_, fout), jnp.bfloat16),
        grid=grid,
        in_specs=[pl.BlockSpec((row_tile, fin), lambda i: (i, 0)),
                  pl.BlockSpec((fin, fout), lambda i: (0, 0))],
        out_specs=pl.BlockSpec((row_tile, fout), lambda i: (i, 0)),
        compiler_params=pltpu.CompilerParams(
            dimension_semantics=("parallel",),
            vmem_limit_bytes=_vmem_limit(need, vmem_cap)),
        cost_estimate=cost,
    )(h_bf16, w_bf16)


def gcn_aggregate(a_bf16, hw_bf16, b_f32, *, row_tile, k_tile, vmem_cap):
    np_ = a_bf16.shape[0]
    fout = hw_bf16.shape[1]
    assert np_ % row_tile == 0 and np_ % k_tile == 0, (np_, row_tile, k_tile)
    row_steps, k_steps = np_ // row_tile, np_ // k_tile
    grid = (row_steps, k_steps)

    hw_reads = hw_bf16.size * (row_steps if k_steps > 1 else 1)
    cost = pl.CostEstimate(
        flops=2 * np_ * np_ * fout, transcendentals=0,
        bytes_accessed=int(2 * a_bf16.size + 2 * hw_reads + 2 * np_ * fout
                           + 4 * b_f32.size))

    # Per-step footprint: double-buffered A tile and HW block, bias, output
    # tile, f32 accumulator.  (Mosaic may single-buffer grid-invariant blocks;
    # budget conservatively assumes double buffering.)
    need = (2 * row_tile * k_tile * 2 + 2 * k_tile * fout * 2 + 2 * fout * 4
            + 2 * row_tile * fout * 2 + row_tile * fout * 4)

    return pl.pallas_call(
        gcn_aggregate_kernel,
        out_shape=jax.ShapeDtypeStruct((np_, fout), jnp.bfloat16),
        grid=grid,
        in_specs=[
            pl.BlockSpec((row_tile, k_tile), lambda i, k: (i, k)),  # A block
            pl.BlockSpec((k_tile, fout), lambda i, k: (k, 0)),      # HW block
            pl.BlockSpec((1, fout), lambda i, k: (0, 0)),           # bias
        ],
        out_specs=pl.BlockSpec((row_tile, fout), lambda i, k: (i, 0)),
        scratch_shapes=[pltpu.VMEM((row_tile, fout), jnp.float32)],
        compiler_params=pltpu.CompilerParams(
            dimension_semantics=("parallel", "arbitrary"),
            vmem_limit_bytes=_vmem_limit(need, vmem_cap)),
        cost_estimate=cost,
    )(a_bf16, hw_bf16, b_f32)


def pool_head(pool_bf16, h2_bf16, w3_bf16, b3_f32, num_classes, *,
              pool_tile, vmem_cap):
    bp, np_ = pool_bf16.shape
    hp = h2_bf16.shape[1]
    cp = w3_bf16.shape[1]
    assert np_ % pool_tile == 0, (np_, pool_tile)
    grid = (np_ // pool_tile,)
    kern = functools.partial(pool_head_kernel, num_classes=num_classes)
    need = (2 * bp * pool_tile * 2 + 2 * pool_tile * hp * 2 + 2 * hp * cp * 2
            + 2 * cp * 4 + 2 * bp * cp * 4 + bp * hp * 4)
    cost = pl.CostEstimate(
        flops=2 * bp * np_ * hp + 2 * bp * hp * cp,
        transcendentals=bp * cp,
        bytes_accessed=int(2 * (pool_bf16.size + h2_bf16.size + w3_bf16.size)
                           + 4 * (b3_f32.size + bp * cp)))
    return pl.pallas_call(
        kern,
        out_shape=jax.ShapeDtypeStruct((bp, cp), jnp.float32),
        grid=grid,
        in_specs=[
            pl.BlockSpec((bp, pool_tile), lambda k: (0, k)),
            pl.BlockSpec((pool_tile, hp), lambda k: (k, 0)),
            pl.BlockSpec((hp, cp), lambda k: (0, 0)),
            pl.BlockSpec((1, cp), lambda k: (0, 0)),
        ],
        out_specs=pl.BlockSpec((bp, cp), lambda k: (0, 0)),
        scratch_shapes=[pltpu.VMEM((bp, hp), jnp.float32)],
        compiler_params=pltpu.CompilerParams(
            dimension_semantics=("arbitrary",),
            vmem_limit_bytes=_vmem_limit(need, vmem_cap)),
        cost_estimate=cost,
    )(pool_bf16, h2_bf16, w3_bf16, b3_f32)


def _fused_vmem_bytes(np_, fp, hp, cp, bp):
    # inputs resident once + generous allowance for f32 intermediates
    return (np_ * np_ * 2 + np_ * fp * 2 + bp * np_ * 2
            + fp * hp * 2 + hp * hp * 2 + hp * cp * 2 + (2 * hp + cp) * 4
            + 3 * np_ * hp * 4 + bp * hp * 4 + 2 * bp * cp * 4)


def fused_forward(a_bf16, x_bf16, w1, b1, w2, b2, pool_bf16, w3, b3,
                  num_classes, *, vmem_cap):
    np_ = a_bf16.shape[0]
    fp = x_bf16.shape[1]
    hp = w1.shape[1]
    cp = w3.shape[1]
    bp = pool_bf16.shape[0]
    kern = functools.partial(fused_forward_kernel, num_classes=num_classes)
    need = _fused_vmem_bytes(np_, fp, hp, cp, bp)
    flops = (2 * np_ * fp * hp + 4 * np_ * np_ * hp + 2 * np_ * hp * hp
             + 2 * bp * np_ * hp + 2 * bp * hp * cp)
    cost = pl.CostEstimate(
        flops=flops, transcendentals=bp * cp,
        bytes_accessed=int(2 * (a_bf16.size + x_bf16.size + pool_bf16.size
                                + w1.size + w2.size + w3.size)
                           + 4 * (b1.size + b2.size + b3.size + bp * cp)))
    return pl.pallas_call(
        kern,
        out_shape=jax.ShapeDtypeStruct((bp, cp), jnp.float32),
        in_specs=[pl.BlockSpec(memory_space=pltpu.VMEM)] * 9,
        out_specs=pl.BlockSpec(memory_space=pltpu.VMEM),
        compiler_params=pltpu.CompilerParams(
            vmem_limit_bytes=_vmem_limit(need, vmem_cap)),
        cost_estimate=cost,
    )(a_bf16, x_bf16, w1, b1, w2, b2, pool_bf16, w3, b3)


def gcn_classifier_forward(a_hat, x, w1, b1, w2, b2, pool, w3, b3, *,
                           row_tile=None, k_tile=None, pool_tile=None,
                           use_fused=None):
    """Full classifier forward: 2x GCN layer, global mean pool, head, softmax."""
    cfg = _generation_config()
    vmem_cap = cfg["vmem_cap"]

    n, f = x.shape
    h = w1.shape[1]
    b = pool.shape[0]
    c = w3.shape[1]

    fp = _round_up(max(f, LANE), LANE)
    hp = _round_up(max(h, LANE), LANE)
    cp = _round_up(max(c, LANE), LANE)
    bp = _round_up(max(b, SUBLANE), SUBLANE)
    np0 = _round_up(max(n, LANE), LANE)

    # fused single-launch path when the padded A comfortably fits VMEM
    if use_fused is None:
        use_fused = _fused_vmem_bytes(np0, fp, hp, cp, bp) <= vmem_cap // 2

    if use_fused:
        np_ = np0
    else:
        row_tile = _clamp_tile(row_tile or cfg["row_tile"], np0)
        k_tile = _clamp_tile(k_tile or cfg["k_tile"], np0)
        pool_tile = _clamp_tile(pool_tile or cfg["pool_tile"], np0)
        np_ = _round_up(np0, math.lcm(row_tile, k_tile, pool_tile))

    # zero padding keeps semantics exact: padded A / pool COLUMNS are zero, so
    # garbage in padded node rows never reaches valid outputs.
    a_p = _pad2d(a_hat, np_, np_).astype(jnp.bfloat16)
    x_p = _pad2d(x, np_, fp).astype(jnp.bfloat16)
    w1_p = _pad2d(w1, fp, hp).astype(jnp.bfloat16)
    b1_p = _pad2d(b1.reshape(1, -1), 1, hp).astype(jnp.float32)
    w2_p = _pad2d(w2, hp, hp).astype(jnp.bfloat16)
    b2_p = _pad2d(b2.reshape(1, -1), 1, hp).astype(jnp.float32)
    pool_p = _pad2d(pool, bp, np_).astype(jnp.bfloat16)
    w3_p = _pad2d(w3, hp, cp).astype(jnp.bfloat16)
    b3_p = _pad2d(b3.reshape(1, -1), 1, cp).astype(jnp.float32)

    if use_fused:
        probs_p = fused_forward(a_p, x_p, w1_p, b1_p, w2_p, b2_p,
                                pool_p, w3_p, b3_p, c, vmem_cap=vmem_cap)
    else:
        xw1 = feature_project(x_p, w1_p, row_tile=row_tile, vmem_cap=vmem_cap)
        h1 = gcn_aggregate(a_p, xw1, b1_p, row_tile=row_tile, k_tile=k_tile,
                           vmem_cap=vmem_cap)
        hw2 = feature_project(h1, w2_p, row_tile=row_tile, vmem_cap=vmem_cap)
        h2 = gcn_aggregate(a_p, hw2, b2_p, row_tile=row_tile, k_tile=k_tile,
                           vmem_cap=vmem_cap)
        probs_p = pool_head(pool_p, h2, w3_p, b3_p, c, pool_tile=pool_tile,
                            vmem_cap=vmem_cap)
    return probs_p[:b, :c]


# ------------------------- plain-JAX graph glue -------------------------------


def build_normalized_adjacency(edge_index, edge_weight, num_nodes):
    """Dense GCN adjacency D^-1/2 (A + I) D^-1/2 from edge_index / edge_attr."""
    src, dst = edge_index[0], edge_index[1]
    adj = jnp.zeros((num_nodes, num_nodes), jnp.float32)
    adj = adj.at[src, dst].add(edge_weight)
    adj = adj + jnp.eye(num_nodes, dtype=jnp.float32)
    deg = jnp.sum(adj, axis=1)
    d_inv_sqrt = 1.0 / jnp.sqrt(jnp.maximum(deg, 1e-12))
    return adj * d_inv_sqrt[:, None] * d_inv_sqrt[None, :]


def build_mean_pool_matrix(batch, num_graphs, num_nodes):
    """(B, N) matrix performing global mean pool per graph (from data.batch)."""
    one_hot = (batch[None, :] == jnp.arange(num_graphs)[:, None]).astype(jnp.float32)
    counts = jnp.maximum(jnp.sum(one_hot, axis=1, keepdims=True), 1.0)
    return one_hot / counts


def _reference(a_hat, x, w1, b1, w2, b2, pool, w3, b3):
    h1 = jnp.maximum(a_hat @ (x @ w1) + b1, 0.0)
    h2 = jnp.maximum(a_hat @ (h1 @ w2) + b2, 0.0)
    return jax.nn.softmax(pool @ (h2 @ w3) + b3, axis=-1)


# ------------------------------- demo ------------------------------------------

if __name__ == "__main__":
    key = jax.random.PRNGKey(0)

    def make_case(key, n, f, h, b, c, e):
        k = jax.random.split(key, 8)
        x = jax.random.normal(k[0], (n, f), jnp.float32)
        src = jax.random.randint(k[1], (e,), 0, n)
        dst = jax.random.randint(k[2], (e,), 0, n)
        edge_index = jnp.stack([src, dst], axis=0)                  # (2, E)
        edge_weight = jax.random.uniform(k[3], (e,), jnp.float32)   # data.edge_attr
        batch = jnp.repeat(jnp.arange(b, dtype=jnp.int32), n // b)
        batch = jnp.concatenate([batch, jnp.full((n - batch.shape[0],), b - 1,
                                                 jnp.int32)])       # data.batch
        w1 = jax.random.normal(k[4], (f, h), jnp.float32) * (2.0 / (f + h)) ** 0.5
        b1 = jnp.zeros((1, h), jnp.float32)
        w2 = jax.random.normal(k[5], (h, h), jnp.float32) * (1.0 / h) ** 0.5
        b2 = jnp.zeros((1, h), jnp.float32)
        w3 = jax.random.normal(k[6], (h, c), jnp.float32) * (2.0 / (h + c)) ** 0.5
        b3 = jnp.zeros((1, c), jnp.float32)
        a_hat = build_normalized_adjacency(edge_index, edge_weight, n)
        pool = build_mean_pool_matrix(batch, b, n)
        return a_hat, x, w1, b1, w2, b2, pool, w3, b3, b, c

    # ---- case 1: tiny graph (N=16, F=4, H=32, B=2, C=2) -> fused single launch
    a_hat, x, w1, b1, w2, b2, pool, w3, b3, B, C = make_case(
        jax.random.fold_in(key, 0), n=16, f=4, h=32, b=2, c=2, e=40)
    fwd_fused = jax.jit(gcn_classifier_forward)
    out = jax.block_until_ready(fwd_fused(a_hat, x, w1, b1, w2, b2, pool, w3, b3))
    ref = _reference(a_hat, x, w1, b1, w2, b2, pool, w3, b3)
    assert out.shape == (B, C), out.shape
    assert jnp.allclose(jnp.sum(out, axis=-1), 1.0, atol=1e-3), out
    assert jnp.allclose(out, ref, atol=5e-2), (out, ref)

    # ---- case 2: moderate graph forced through the tiled path so the row/k
    #      tiled aggregation, accumulator pl.when paths and the node-tiled
    #      pool_head all get compiled and checked (small tiles only to force a
    #      multi-step grid at test size; real use keeps the 256/512 defaults).
    a_hat2, x2, w1_2, b1_2, w2_2, b2_2, pool2, w3_2, b3_2, B2, C2 = make_case(
        jax.random.fold_in(key, 1), n=300, f=4, h=32, b=4, c=2, e=1200)
    fwd_tiled = jax.jit(functools.partial(
        gcn_classifier_forward, use_fused=False,
        row_tile=128, k_tile=128, pool_tile=128))
    out2 = jax.block_until_ready(
        fwd_tiled(a_hat2, x2, w1_2, b1_2, w2_2, b2_2, pool2, w3_2, b3_2))
    ref2 = _reference(a_hat2, x2, w1_2, b1_2, w2_2, b2_2, pool2, w3_2, b3_2)
    assert out2.shape == (B2, C2), out2.shape
    assert jnp.allclose(jnp.sum(out2, axis=-1), 1.0, atol=1e-3), out2
    assert jnp.allclose(out2, ref2, atol=5e-2), (out2, ref2)

    print("KERNEL_OK")
</pallas_src>

<mosaic_0001>
module attributes {stable_mosaic.version = 11 : i64} {
  func.func @fused_forward_kernel(%arg0: memref<128x128xbf16, #tpu.memory_space<vmem>>, %arg1: memref<128x128xbf16, #tpu.memory_space<vmem>>, %arg2: memref<128x128xbf16, #tpu.memory_space<vmem>>, %arg3: memref<1x128xf32, #tpu.memory_space<vmem>>, %arg4: memref<128x128xbf16, #tpu.memory_space<vmem>>, %arg5: memref<1x128xf32, #tpu.memory_space<vmem>>, %arg6: memref<8x128xbf16, #tpu.memory_space<vmem>>, %arg7: memref<128x128xbf16, #tpu.memory_space<vmem>>, %arg8: memref<1x128xf32, #tpu.memory_space<vmem>>, %arg9: memref<8x128xf32, #tpu.memory_space<vmem>>) attributes {dimension_semantics = [], scalar_prefetch = 0 : i64, scratch_operands = 0 : i64, tpu.core_type = #tpu.core_type<tc>} {
    %c0 = arith.constant 0 : index
    %c0_0 = arith.constant 0 : index
    %0 = vector.load %arg0[%c0, %c0_0] : memref<128x128xbf16, #tpu.memory_space<vmem>>, vector<128x128xbf16>
    %c0_1 = arith.constant 0 : index
    %c0_2 = arith.constant 0 : index
    %1 = vector.load %arg1[%c0_1, %c0_2] : memref<128x128xbf16, #tpu.memory_space<vmem>>, vector<128x128xbf16>
    %c0_3 = arith.constant 0 : index
    %c0_4 = arith.constant 0 : index
    %2 = vector.load %arg2[%c0_3, %c0_4] : memref<128x128xbf16, #tpu.memory_space<vmem>>, vector<128x128xbf16>
    %cst = arith.constant dense<0.000000e+00> : vector<128x128xf32>
    %3 = tpu.matmul %1, %2, %cst {dimension_numbers = #tpu.dot_dimension_numbers<[1], [0], [0], [1], [0, 0, 1, 1], [], []>} : vector<128x128xbf16>, vector<128x128xbf16>, vector<128x128xf32> -> vector<128x128xf32>
    %4 = arith.truncf %3 : vector<128x128xf32> to vector<128x128xbf16>
    %cst_5 = arith.constant dense<0.000000e+00> : vector<128x128xf32>
    %5 = tpu.matmul %0, %4, %cst_5 {dimension_numbers = #tpu.dot_dimension_numbers<[1], [0], [0], [1], [0, 0, 1, 1], [], []>} : vector<128x128xbf16>, vector<128x128xbf16>, vector<128x128xf32> -> vector<128x128xf32>
    %c0_6 = arith.constant 0 : index
    %c0_7 = arith.constant 0 : index
    %6 = vector.load %arg3[%c0_6, %c0_7] : memref<1x128xf32, #tpu.memory_space<vmem>>, vector<1x128xf32>
    %7 = vector.broadcast %6 : vector<1x128xf32> to vector<128x128xf32>
    %8 = arith.addf %5, %7 : vector<128x128xf32>
    %cst_8 = arith.constant 0.000000e+00 : f32
    %9 = vector.broadcast %cst_8 : f32 to vector<128x128xf32>
    %10 = arith.maximumf %8, %9 : vector<128x128xf32>
    %11 = arith.truncf %10 : vector<128x128xf32> to vector<128x128xbf16>
    %c0_9 = arith.constant 0 : index
    %c0_10 = arith.constant 0 : index
    %12 = vector.load %arg4[%c0_9, %c0_10] : memref<128x128xbf16, #tpu.memory_space<vmem>>, vector<128x128xbf16>
    %cst_11 = arith.constant dense<0.000000e+00> : vector<128x128xf32>
    %13 = tpu.matmul %11, %12, %cst_11 {dimension_numbers = #tpu.dot_dimension_numbers<[1], [0], [0], [1], [0, 0, 1, 1], [], []>} : vector<128x128xbf16>, vector<128x128xbf16>, vector<128x128xf32> -> vector<128x128xf32>
    %14 = arith.truncf %13 : vector<128x128xf32> to vector<128x128xbf16>
    %cst_12 = arith.constant dense<0.000000e+00> : vector<128x128xf32>
    %15 = tpu.matmul %0, %14, %cst_12 {dimension_numbers = #tpu.dot_dimension_numbers<[1], [0], [0], [1], [0, 0, 1, 1], [], []>} : vector<128x128xbf16>, vector<128x128xbf16>, vector<128x128xf32> -> vector<128x128xf32>
    %c0_13 = arith.constant 0 : index
    %c0_14 = arith.constant 0 : index
    %16 = vector.load %arg5[%c0_13, %c0_14] : memref<1x128xf32, #tpu.memory_space<vmem>>, vector<1x128xf32>
    %17 = vector.broadcast %16 : vector<1x128xf32> to vector<128x128xf32>
    %18 = arith.addf %15, %17 : vector<128x128xf32>
    %cst_15 = arith.constant 0.000000e+00 : f32
    %19 = vector.broadcast %cst_15 : f32 to vector<128x128xf32>
    %20 = arith.maximumf %18, %19 : vector<128x128xf32>
    %c0_16 = arith.constant 0 : index
    %c0_17 = arith.constant 0 : index
    %21 = vector.load %arg6[%c0_16, %c0_17] : memref<8x128xbf16, #tpu.memory_space<vmem>>, vector<8x128xbf16>
    %22 = arith.truncf %20 : vector<128x128xf32> to vector<128x128xbf16>
    %cst_18 = arith.constant dense<0.000000e+00> : vector<8x128xf32>
    %23 = tpu.matmul %21, %22, %cst_18 {dimension_numbers = #tpu.dot_dimension_numbers<[1], [0], [0], [1], [0, 0, 1, 1], [], []>} : vector<8x128xbf16>, vector<128x128xbf16>, vector<8x128xf32> -> vector<8x128xf32>
    %24 = arith.truncf %23 : vector<8x128xf32> to vector<8x128xbf16>
    %c0_19 = arith.constant 0 : index
    %c0_20 = arith.constant 0 : index
    %25 = vector.load %arg7[%c0_19, %c0_20] : memref<128x128xbf16, #tpu.memory_space<vmem>>, vector<128x128xbf16>
    %cst_21 = arith.constant dense<0.000000e+00> : vector<8x128xf32>
    %26 = tpu.matmul %24, %25, %cst_21 {dimension_numbers = #tpu.dot_dimension_numbers<[1], [0], [0], [1], [0, 0, 1, 1], [], []>} : vector<8x128xbf16>, vector<128x128xbf16>, vector<8x128xf32> -> vector<8x128xf32>
    %c0_22 = arith.constant 0 : index
    %c0_23 = arith.constant 0 : index
    %27 = vector.load %arg8[%c0_22, %c0_23] : memref<1x128xf32, #tpu.memory_space<vmem>>, vector<1x128xf32>
    %28 = vector.broadcast %27 : vector<1x128xf32> to vector<8x128xf32>
    %29 = arith.addf %26, %28 : vector<8x128xf32>
    %30 = tpu.iota {dimensions = array<i32: 1>} : vector<8x128xi32>
    %c2_i32 = arith.constant 2 : i32
    %31 = vector.broadcast %c2_i32 : i32 to vector<8x128xi32>
    %32 = arith.cmpi slt, %30, %31 : vector<8x128xi32>
    %cst_24 = arith.constant -1.000000e+30 : f32
    %33 = vector.broadcast %cst_24 : f32 to vector<8x128xf32>
    %34 = arith.select %32, %29, %33 : vector<8x128xi1>, vector<8x128xf32>
    %cst_25 = arith.constant dense<0xFF800000> : vector<8xf32>
    %35 = vector.multi_reduction <maximumf>, %34, %cst_25 [1] : vector<8x128xf32> to vector<8xf32>
    %36 = vector.shape_cast %35 : vector<8xf32> to vector<8x1xf32>
    %37 = vector.broadcast %36 : vector<8x1xf32> to vector<8x128xf32>
    %38 = arith.subf %34, %37 : vector<8x128xf32>
    %39 = math.exp %38 : vector<8x128xf32>
    %cst_26 = arith.constant dense<0.000000e+00> : vector<8xf32>
    %40 = vector.multi_reduction <add>, %39, %cst_26 [1] : vector<8x128xf32> to vector<8xf32>
    %41 = vector.shape_cast %40 : vector<8xf32> to vector<8x1xf32>
    %42 = vector.broadcast %41 : vector<8x1xf32> to vector<8x128xf32>
    %43 = arith.divf %39, %42 : vector<8x128xf32>
    %c0_27 = arith.constant 0 : index
    %c0_28 = arith.constant 0 : index
    %44 = vector.load %arg9[%c0_27, %c0_28] : memref<8x128xf32, #tpu.memory_space<vmem>>, vector<8x128xf32>
    tpu.vector_store %arg9[%c0_27, %c0_28], %43 {strides = array<i32>} : memref<8x128xf32, #tpu.memory_space<vmem>>, vector<8x128xf32>,
    return
  }
}

</mosaic_0001>

<bundles_post_ra>
// kernel: gcn_classifier_forward.1
= control target key start
LH: loop header
LB: loop body
LE: loop exit
PB: predicated region body
PF: predicated region fallthrough
CT: control target
= control target key end

     0   :  { %vm1266_vm0 = vmmov 0   ;;  %s1502_s2 = inlined_call_operand.vmem [shape: bf16[128,128], index: 2, kind: input, shape index: {}]   ;;  %s1503_s1 = inlined_call_operand.vmem [shape: bf16[128,128], index: 1, kind: input, shape index: {}]   ;;  %s1504_s0 = inlined_call_operand.vmem [shape: bf16[128,128], index: 0, kind: input, shape index: {}]   ;;  %s1505_s4 = inlined_call_operand.vmem [shape: bf16[128,128], index: 4, kind: input, shape index: {}]   ;;  %s1506_s3 = inlined_call_operand.vmem [shape: f32[1,128], index: 3, kind: input, shape index: {}]   ;;  %s1507_s7 = inlined_call_operand.vmem [shape: bf16[128,128], index: 7, kind: input, shape index: {}]   ;;  %s1508_s5 = inlined_call_operand.vmem [shape: f32[1,128], index: 5, kind: input, shape index: {}]   ;;  %s1509_s6 = inlined_call_operand.vmem [shape: bf16[8,128], index: 6, kind: input, shape index: {}]   ;;  %s1510_s8 = inlined_call_operand.vmem [shape: f32[1,128], index: 8, kind: input, shape index: {}]   ;;  %s1511_s9 = inlined_call_operand.vmem [shape: f32[8,128], index: 9, kind: output, shape index: {}]  }
   0x1   :  { %v1221_v0 = vld [vmem:[%s1502_s2] sm:$0xff]   ;;  %v1222_v1 = vld [vmem:[%s1502_s2 + $0x8] sm:$0xff]   ;;  %v1223_v2 = vld [vmem:[%s1502_s2 + $0x10] sm:$0xff]  }
   0x2   :  { %1051 = vmatprep.subr.bf16.mxu0 %v1221_v0  ;;  %v1224_v3 = vld [vmem:[%s1502_s2 + $0x18] sm:$0xff]   ;;  %v1229_v4 = vld [vmem:[%s1503_s1] sm:$0xff]   ;;  %v1226_v6 = vld [vmem:[%s1502_s2 + $0x28] sm:$0xff]  }
   0x3   :  { %1052 = vmatpush3.bf16.msra.mxu0 %v1221_v0  ;;  %1067 = vmatprep.mubr.bf16.mxu0 %v1229_v4  ;;  %v1225_v5 = vld [vmem:[%s1502_s2 + $0x20] sm:$0xff]   ;;  %v1227_v7 = vld [vmem:[%s1502_s2 + $0x30] sm:$0xff]   ;;  %v1228_v8 = vld [vmem:[%s1502_s2 + $0x38] sm:$0xff]  }
   0x4   :  { %1053 = vmatprep.subr.bf16.mxu0 %v1222_v1  ;;  %v1230_v9 = vld [vmem:[%s1503_s1 + $0x8] sm:$0xff]   ;;  %v1231_v10 = vld [vmem:[%s1503_s1 + $0x10] sm:$0xff]   ;;  %v1232_v11 = vld [vmem:[%s1503_s1 + $0x18] sm:$0xff]  }
   0x5   :  { %v1233_v12 = vld [vmem:[%s1503_s1 + $0x20] sm:$0xff]   ;;  %v1234_v13 = vld [vmem:[%s1503_s1 + $0x28] sm:$0xff]   ;;  %v1235_v14 = vld [vmem:[%s1503_s1 + $0x30] sm:$0xff]  }
   0x6   :  { %v1236_v15 = vld [vmem:[%s1503_s1 + $0x38] sm:$0xff]   ;;  %v1368_v16 = vld [vmem:[%s1504_s0] sm:$0xff]   ;;  %v1246_v18 = vld [vmem:[%s1505_s4 + $0x8] sm:$0xff]  }
   0x7   :  { %1054 = vmatpush3.bf16.msra.mxu0 %v1222_v1  ;;  %1099 = vmatprep.mubr.bf16.mxu1 %v1368_v16  ;;  %v1245_v17 = vld [vmem:[%s1505_s4] sm:$0xff]   ;;  %v1247_v19 = vld [vmem:[%s1505_s4 + $0x10] sm:$0xff]   ;;  %v1248_v20 = vld [vmem:[%s1505_s4 + $0x18] sm:$0xff]  }
   0x8   :  { %1055 = vmatprep.subr.bf16.mxu0 %v1223_v2  ;;  %v1249_v21 = vld [vmem:[%s1505_s4 + $0x20] sm:$0xff]   ;;  %v1250_v22 = vld [vmem:[%s1505_s4 + $0x28] sm:$0xff]   ;;  %v1397_v48 = vld [vmem:[%s1504_s0 + $0x10] sm:$0xff]  }
   0x9   :  { %v1392_v47 = vld [vmem:[%s1504_s0 + $0x8] sm:$0xff]   ;;  %v1404_v49 = vld [vmem:[%s1504_s0 + $0x18] sm:$0xff]   ;;  %v1409_v50 = vld [vmem:[%s1504_s0 + $0x20] sm:$0xff]  }
   0xa   :  { %v1416_v51 = vld [vmem:[%s1504_s0 + $0x28] sm:$0xff]   ;;  %v1421_v52 = vld [vmem:[%s1504_s0 + $0x30] sm:$0xff]   ;;  %v1428_v53 = vld [vmem:[%s1504_s0 + $0x38] sm:$0xff]  }
   0xb   :  { %1056 = vmatpush3.bf16.msra.mxu0 %v1223_v2  ;;  %v1251_v54 = vld [vmem:[%s1505_s4 + $0x30] sm:$0xff]   ;;  %v1252_v55 = vld [vmem:[%s1505_s4 + $0x38] sm:$0xff]   ;;  %v942_v56 = vld [vmem:[%s1506_s3] ss:$0 sm:$0xff] }
   0xc   :  { %1057 = vmatprep.subr.bf16.mxu0 %v1224_v3 }
   0xf   :  { %1058 = vmatpush3.bf16.msra.mxu0 %v1224_v3 }
  0x10   :  { %1059 = vmatprep.subr.bf16.mxu0 %v1225_v5 }
  0x13   :  { %1060 = vmatpush3.bf16.msra.mxu0 %v1225_v5 }
  0x14   :  { %1061 = vmatprep.subr.bf16.mxu0 %v1226_v6 }
  0x17   :  { %1062 = vmatpush3.bf16.msra.mxu0 %v1226_v6 }
  0x18   :  { %1063 = vmatprep.subr.bf16.mxu0 %v1227_v7 }
  0x1b   :  { %1064 = vmatpush3.bf16.msra.mxu0 %v1227_v7 }
  0x1c   :  { %1065 = vmatprep.subr.bf16.mxu0 %v1228_v8 }
  0x1f   :  { %1066 = vmatpush3.bf16.msra.mxu0 %v1228_v8 }
  0x20   :  { %1115 = vmatprep.subr.bf16.mxu0 %v1245_v17 }
  0x22   :  { %1068 = vmatmul.mubr.bf16.vlgmr.msra.gmra.mrb[0].mxu0 %v1230_v9 }
  0x23   :  { %1071 = vmatprep.mubr.bf16.mxu0 %v1231_v10  ;;  %1116 = vmatpush3.bf16.msra.mxu0 %v1245_v17 }
  0x24   :  { %1117 = vmatprep.subr.bf16.mxu0 %v1246_v18 }
  0x27   :  { %1118 = vmatpush3.bf16.msra.mxu0 %v1246_v18 }
  0x28   :  { %1119 = vmatprep.subr.bf16.mxu0 %v1247_v19 }
  0x2a   :  { %1072 = vmatmul.mubr.bf16.gmra.mrb[4].mxu0 %v1232_v11 }
  0x2b   :  { %1075 = vmatprep.mubr.bf16.mxu0 %v1233_v12  ;;  %1120 = vmatpush3.bf16.msra.mxu0 %v1247_v19 }
  0x2c   :  { %1121 = vmatprep.subr.bf16.mxu0 %v1248_v20 }
  0x2f   :  { %1122 = vmatpush3.bf16.msra.mxu0 %v1248_v20 }
  0x30   :  { %1123 = vmatprep.subr.bf16.mxu0 %v1249_v21 }
  0x32   :  { %1076 = vmatmul.mubr.bf16.gmra.mrb[8].mxu0 %v1234_v13 }
  0x33   :  { %1079 = vmatprep.mubr.bf16.mxu0 %v1235_v14  ;;  %1124 = vmatpush3.bf16.msra.mxu0 %v1249_v21 }
  0x34   :  { %1125 = vmatprep.subr.bf16.mxu0 %v1250_v22 }
  0x37   :  { %1126 = vmatpush3.bf16.msra.mxu0 %v1250_v22 }
  0x38   :  { %1127 = vmatprep.subr.bf16.mxu0 %v1251_v54 }
  0x3a   :  { %1080 = vmatmul.mubr.bf16.gmra.mrb[12].mxu0 %v1236_v15 }
  0x3b   :  { %1128 = vmatpush3.bf16.msra.mxu0 %v1251_v54 }
  0x3c   :  { %1129 = vmatprep.subr.bf16.mxu0 %v1252_v55 }
  0x3f   :  { %1130 = vmatpush3.bf16.msra.mxu0 %v1252_v55 }
  0xf5   :  { %v1069_v23 = vpop.f32.mrb[0].mxu0 }
  0xf6   :  { %v211_v24 = vpop.f32.mrb[1].mxu0 }
  0xf7   :  { %v1070_v25 = vpop.f32.mrb[2].mxu0 }
  0xf8   :  { %v275_v26 = vpack.c.bf16 %v1070_v25, %v1069_v23  ;;  %v214_v27 = vpop.f32.mrb[3].mxu0 }
  0xf9   :  { %v274_v28 = vpack.c.bf16 %v214_v27, %v211_v24 }
  0xfb   :  { %1083 = vmatprep.subr.bf16.mxu1 %v274_v28 }
  0xfc   :  { %1084 = vmatpush3.bf16.msra.mxu1 %v274_v28 }
  0xfd   :  { %v1073_v29 = vpop.f32.mrb[4].mxu0  ;;  %1085 = vmatprep.subr.bf16.mxu1 %v275_v26 }
  0xfe   :  { %v227_v30 = vpop.f32.mrb[5].mxu0 }
  0xff   :  { %v1074_v31 = vpop.f32.mrb[6].mxu0 }
 0x100   :  { %v277_v32 = vpack.c.bf16 %v1074_v31, %v1073_v29  ;;  %v230_v33 = vpop.f32.mrb[7].mxu0  ;;  %1086 = vmatpush3.bf16.msra.mxu1 %v275_v26 }
 0x101   :  { %v276_v34 = vpack.c.bf16 %v230_v33, %v227_v30 }
 0x103   :  { %1087 = vmatprep.subr.bf16.mxu1 %v276_v34 }
 0x104   :  { %1088 = vmatpush3.bf16.msra.mxu1 %v276_v34 }
 0x105   :  { %v1077_v35 = vpop.f32.mrb[8].mxu0  ;;  %1089 = vmatprep.subr.bf16.mxu1 %v277_v32 }
 0x106   :  { %v243_v36 = vpop.f32.mrb[9].mxu0 }
 0x107   :  { %v1078_v37 = vpop.f32.mrb[10].mxu0 }
 0x108   :  { %v279_v38 = vpack.c.bf16 %v1078_v37, %v1077_v35  ;;  %v246_v39 = vpop.f32.mrb[11].mxu0  ;;  %1090 = vmatpush3.bf16.msra.mxu1 %v277_v32 }
 0x109   :  { %v278_v40 = vpack.c.bf16 %v246_v39, %v243_v36 }
 0x10b   :  { %1091 = vmatprep.subr.bf16.mxu1 %v278_v40 }
 0x10c   :  { %1092 = vmatpush3.bf16.msra.mxu1 %v278_v40 }
 0x10d   :  { %v1081_v41 = vpop.f32.mrb[12].mxu0  ;;  %1093 = vmatprep.subr.bf16.mxu1 %v279_v38 }
 0x10e   :  { %v259_v42 = vpop.f32.mrb[13].mxu0 }
 0x10f   :  { %v1082_v43 = vpop.f32.mrb[14].mxu0 }
 0x110   :  { %v281_v44 = vpack.c.bf16 %v1082_v43, %v1081_v41  ;;  %v262_v45 = vpop.f32.mrb[15].mxu0  ;;  %1094 = vmatpush3.bf16.msra.mxu1 %v279_v38 }
 0x111   :  { %v280_v46 = vpack.c.bf16 %v262_v45, %v259_v42 }
 0x113   :  { %1095 = vmatprep.subr.bf16.mxu1 %v280_v46 }
 0x114   :  { %1096 = vmatpush3.bf16.msra.mxu1 %v280_v46 }
 0x115   :  { %1097 = vmatprep.subr.bf16.mxu1 %v281_v44 }
 0x118   :  { %1098 = vmatpush3.bf16.msra.mxu1 %v281_v44 }
 0x11b   :  { %1100 = vmatmul.mubr.bf16.vlgmr.msra.gmra.mrb[0].mxu1 %v1392_v47 }
 0x11c   :  { %1103 = vmatprep.mubr.bf16.mxu1 %v1397_v48 }
 0x123   :  { %1104 = vmatmul.mubr.bf16.gmra.mrb[4].mxu1 %v1404_v49 }
 0x124   :  { %1107 = vmatprep.mubr.bf16.mxu1 %v1409_v50 }
 0x12b   :  { %1108 = vmatmul.mubr.bf16.gmra.mrb[8].mxu1 %v1416_v51 }
 0x12c   :  { %1111 = vmatprep.mubr.bf16.mxu1 %v1421_v52 }
 0x133   :  { %1112 = vmatmul.mubr.bf16.gmra.mrb[12].mxu1 %v1428_v53 }
 0x134   :  { %1163 = vmatprep.mubr.bf16.mxu1 %v1368_v16 }
 0x1ee   :  { %v1101_v57 = vpop.f32.mrb[0].mxu1 }
 0x1ef   :  { %v380_v58 = vadd.f32 %v1101_v57, %v942_v56  ;;  %v371_v59 = vpop.f32.mrb[1].mxu1 }
 0x1f0   :  { %v372_v60 = vadd.f32 %v942_v56, %v371_v59  ;;  %v1102_v61 = vpop.f32.mrb[2].mxu1 }
 0x1f1   :  { %v383_v62 = vadd.f32 %v1102_v61, %v942_v56  ;;  %v374_v63 = vpop.f32.mrb[3].mxu1  ;;  %v436_v1 = vmax.f32 %v380_v58, 0.0 }
 0x1f2   :  { %v375_v0 = vadd.f32 %v942_v56, %v374_v63  ;;  %v434_v3 = vmax.f32 %v372_v60, 0.0 }
 0x1f3   :  { %v437_v2 = vmax.f32 %v383_v62, 0.0 }
 0x1f4   :  { %v435_v4 = vmax.f32 %v375_v0, 0.0 }
 0x1f5   :  { %v451_v5 = vpack.c.bf16 %v437_v2, %v436_v1 }
 0x1f6   :  { %v450_v6 = vpack.c.bf16 %v435_v4, %v434_v3  ;;  %v1105_v7 = vpop.f32.mrb[4].mxu1 }
 0x1f7   :  { %v396_v8 = vadd.f32 %v1105_v7, %v942_v56  ;;  %v387_v9 = vpop.f32.mrb[5].mxu1 }
 0x1f8   :  { %v388_v10 = vadd.f32 %v942_v56, %v387_v9  ;;  %v1106_v11 = vpop.f32.mrb[6].mxu1  ;;  %1131 = vmatprep.mubr.bf16.mxu0 %v450_v6 }
 0x1f9   :  { %v399_v12 = vadd.f32 %v1106_v11, %v942_v56  ;;  %v390_v13 = vpop.f32.mrb[7].mxu1  ;;  %1132 = vmatmul.mubr.bf16.vlgmr.msra.gmra.mrb[16].mxu0 %v451_v5  ;;  %v440_v15 = vmax.f32 %v396_v8, 0.0 }
 0x1fa   :  { %v391_v14 = vadd.f32 %v942_v56, %v390_v13  ;;  %v438_v17 = vmax.f32 %v388_v10, 0.0 }
 0x1fb   :  { %v441_v16 = vmax.f32 %v399_v12, 0.0 }
 0x1fc   :  { %v439_v18 = vmax.f32 %v391_v14, 0.0 }
 0x1fd   :  { %v453_v19 = vpack.c.bf16 %v441_v16, %v440_v15  ;;  %v1265_v16 = vmov 0.0  }
 0x1fe   :  { %v452_v20 = vpack.c.bf16 %v439_v18, %v438_v17  ;;  %v1109_v21 = vpop.f32.mrb[8].mxu1  ;;  %1179 = vmatprep.subr.bf16.mxu0 %v1265_v16  ;;  %v959_v17 = vld [vmem:[%s1508_s5] ss:$0 sm:$0xff] }
 0x1ff   :  { %v412_v22 = vadd.f32 %v1109_v21, %v942_v56  ;;  %v403_v23 = vpop.f32.mrb[9].mxu1 }
 0x200   :  { %v404_v24 = vadd.f32 %v942_v56, %v403_v23  ;;  %v1110_v25 = vpop.f32.mrb[10].mxu1  ;;  %1135 = vmatprep.mubr.bf16.mxu0 %v452_v20 }
 0x201   :  { %v415_v26 = vadd.f32 %v1110_v25, %v942_v56  ;;  %v406_v27 = vpop.f32.mrb[11].mxu1  ;;  %1136 = vmatmul.mubr.bf16.gmra.mrb[20].mxu0 %v453_v19  ;;  %v444_v29 = vmax.f32 %v412_v22, 0.0 }
 0x202   :  { %v407_v28 = vadd.f32 %v942_v56, %v406_v27  ;;  %v442_v31 = vmax.f32 %v404_v24, 0.0 }
 0x203   :  { %v445_v30 = vmax.f32 %v415_v26, 0.0 }
 0x204   :  { %v443_v32 = vmax.f32 %v407_v28, 0.0 }
 0x205   :  { %v455_v33 = vpack.c.bf16 %v445_v30, %v444_v29 }
 0x206   :  { %v454_v34 = vpack.c.bf16 %v443_v32, %v442_v31  ;;  %v1113_v35 = vpop.f32.mrb[12].mxu1 }
 0x207   :  { %v428_v36 = vadd.f32 %v1113_v35, %v942_v56  ;;  %v419_v37 = vpop.f32.mrb[13].mxu1 }
 0x208   :  { %v420_v38 = vadd.f32 %v942_v56, %v419_v37  ;;  %v1114_v39 = vpop.f32.mrb[14].mxu1  ;;  %1139 = vmatprep.mubr.bf16.mxu0 %v454_v34 }
 0x209   :  { %v431_v40 = vadd.f32 %v1114_v39, %v942_v56  ;;  %v422_v41 = vpop.f32.mrb[15].mxu1  ;;  %1140 = vmatmul.mubr.bf16.gmra.mrb[24].mxu0 %v455_v33  ;;  %v448_v43 = vmax.f32 %v428_v36, 0.0 }
 0x20a   :  { %v423_v42 = vadd.f32 %v942_v56, %v422_v41  ;;  %v446_v45 = vmax.f32 %v420_v38, 0.0 }
 0x20b   :  { %v449_v44 = vmax.f32 %v431_v40, 0.0 }
 0x20c   :  { %v447_v46 = vmax.f32 %v423_v42, 0.0 }
 0x20d   :  { %v457_v54 = vpack.c.bf16 %v449_v44, %v448_v43 }
 0x20e   :  { %v456_v55 = vpack.c.bf16 %v447_v46, %v446_v45 }
 0x210   :  { %1143 = vmatprep.mubr.bf16.mxu0 %v456_v55 }
 0x211   :  { %1144 = vmatmul.mubr.bf16.gmra.mrb[28].mxu0 %v457_v54 }
 0x212   :  { %1195 = vmatprep.mubr.msk.bf16.mxu0 %vm1266_vm0, %v1265_v16 }
 0x2cc   :  { %v1133_v57 = vpop.f32.mrb[16].mxu0 }
 0x2cd   :  { %v556_v58 = vpop.f32.mrb[17].mxu0 }
 0x2ce   :  { %v1134_v59 = vpop.f32.mrb[18].mxu0 }
 0x2cf   :  { %v620_v60 = vpack.c.bf16 %v1134_v59, %v1133_v57  ;;  %v559_v61 = vpop.f32.mrb[19].mxu0 }
 0x2d0   :  { %v619_v62 = vpack.c.bf16 %v559_v61, %v556_v58 }
 0x2d2   :  { %1147 = vmatprep.subr.bf16.mxu1 %v619_v62 }
 0x2d3   :  { %1148 = vmatpush3.bf16.msra.mxu1 %v619_v62 }
 0x2d4   :  { %v1137_v63 = vpop.f32.mrb[20].mxu0  ;;  %1149 = vmatprep.subr.bf16.mxu1 %v620_v60 }
 0x2d5   :  { %v572_v0 = vpop.f32.mrb[21].mxu0 }
 0x2d6   :  { %v1138_v56 = vpop.f32.mrb[22].mxu0 }
 0x2d7   :  { %v622_v1 = vpack.c.bf16 %v1138_v56, %v1137_v63  ;;  %v575_v2 = vpop.f32.mrb[23].mxu0  ;;  %1150 = vmatpush3.bf16.msra.mxu1 %v620_v60 }
 0x2d8   :  { %v621_v3 = vpack.c.bf16 %v575_v2, %v572_v0 }
 0x2da   :  { %1151 = vmatprep.subr.bf16.mxu1 %v621_v3 }
 0x2db   :  { %1152 = vmatpush3.bf16.msra.mxu1 %v621_v3 }
 0x2dc   :  { %v1141_v4 = vpop.f32.mrb[24].mxu0  ;;  %1153 = vmatprep.subr.bf16.mxu1 %v622_v1 }
 0x2dd   :  { %v588_v5 = vpop.f32.mrb[25].mxu0 }
 0x2de   :  { %v1142_v6 = vpop.f32.mrb[26].mxu0 }
 0x2df   :  { %v624_v7 = vpack.c.bf16 %v1142_v6, %v1141_v4  ;;  %v591_v8 = vpop.f32.mrb[27].mxu0  ;;  %1154 = vmatpush3.bf16.msra.mxu1 %v622_v1 }
 0x2e0   :  { %v623_v9 = vpack.c.bf16 %v591_v8, %v588_v5 }
 0x2e2   :  { %1155 = vmatprep.subr.bf16.mxu1 %v623_v9 }
 0x2e3   :  { %1156 = vmatpush3.bf16.msra.mxu1 %v623_v9 }
 0x2e4   :  { %v1145_v10 = vpop.f32.mrb[28].mxu0  ;;  %1157 = vmatprep.subr.bf16.mxu1 %v624_v7 }
 0x2e5   :  { %v604_v11 = vpop.f32.mrb[29].mxu0 }
 0x2e6   :  { %v1146_v12 = vpop.f32.mrb[30].mxu0 }
 0x2e7   :  { %v626_v13 = vpack.c.bf16 %v1146_v12, %v1145_v10  ;;  %v607_v14 = vpop.f32.mrb[31].mxu0  ;;  %1158 = vmatpush3.bf16.msra.mxu1 %v624_v7 }
 0x2e8   :  { %v625_v15 = vpack.c.bf16 %v607_v14, %v604_v11 }
 0x2ea   :  { %1159 = vmatprep.subr.bf16.mxu1 %v625_v15 }
 0x2eb   :  { %1160 = vmatpush3.bf16.msra.mxu1 %v625_v15 }
 0x2ec   :  { %1161 = vmatprep.subr.bf16.mxu1 %v626_v13 }
 0x2ef   :  { %1162 = vmatpush3.bf16.msra.mxu1 %v626_v13 }
 0x2f0   :  { %1199 = vmatprep.subr.bf16.mxu1 %v1265_v16 }
 0x2f2   :  { %1164 = vmatmul.mubr.bf16.vlgmr.msra.gmra.mrb[16].mxu1 %v1392_v47  ;;  %v1253_v47 = vld [vmem:[%s1507_s7] sm:$0xff]  }
 0x2f3   :  { %1167 = vmatprep.mubr.bf16.mxu1 %v1397_v48  ;;  %1200 = vmatpush3.bf16.msra.mxu1 %v1253_v47  ;;  %v1254_v48 = vld [vmem:[%s1507_s7 + $0x8] sm:$0xff]  }
 0x2f4   :  { %1201 = vmatprep.subr.bf16.mxu1 %v1265_v16 }
 0x2f7   :  { %1202 = vmatpush3.bf16.msra.mxu1 %v1254_v48  ;;  %v747_v48 = vld [vmem:[%s1509_s6] sm:$0xf] }
 0x2f8   :  { %1203 = vmatprep.subr.bf16.mxu1 %v1265_v16 }
 0x2fa   :  { %1168 = vmatmul.mubr.bf16.gmra.mrb[20].mxu1 %v1404_v49  ;;  %v1255_v49 = vld [vmem:[%s1507_s7 + $0x10] sm:$0xff]  }
 0x2fb   :  { %1171 = vmatprep.mubr.bf16.mxu1 %v1409_v50  ;;  %1204 = vmatpush3.bf16.msra.mxu1 %v1255_v49  ;;  %v1256_v50 = vld [vmem:[%s1507_s7 + $0x18] sm:$0xff]  }
 0x2fc   :  { %1205 = vmatprep.subr.bf16.mxu1 %v1265_v16  ;;  %v1260_v49 = vld [vmem:[%s1507_s7 + $0x38] sm:$0xff]  }
 0x2ff   :  { %1206 = vmatpush3.bf16.msra.mxu1 %v1256_v50 }
 0x300   :  { %1207 = vmatprep.subr.bf16.mxu1 %v1265_v16 }
 0x302   :  { %1172 = vmatmul.mubr.bf16.gmra.mrb[24].mxu1 %v1416_v51  ;;  %v1257_v51 = vld [vmem:[%s1507_s7 + $0x20] sm:$0xff]  }
 0x303   :  { %1175 = vmatprep.mubr.bf16.mxu1 %v1421_v52  ;;  %1208 = vmatpush3.bf16.msra.mxu1 %v1257_v51  ;;  %v1258_v52 = vld [vmem:[%s1507_s7 + $0x28] sm:$0xff]  }
 0x304   :  { %1209 = vmatprep.subr.bf16.mxu1 %v1265_v16 }
 0x307   :  { %1210 = vmatpush3.bf16.msra.mxu1 %v1258_v52 }
 0x308   :  { %1211 = vmatprep.subr.bf16.mxu1 %v1265_v16 }
 0x30a   :  { %1176 = vmatmul.mubr.bf16.gmra.mrb[28].mxu1 %v1428_v53  ;;  %v1259_v53 = vld [vmem:[%s1507_s7 + $0x30] sm:$0xff]  }
 0x30b   :  { %1215 = vmatprep.mubr.msk.bf16.mxu1 %vm1266_vm0, %v1265_v16  ;;  %1212 = vmatpush3.bf16.msra.mxu1 %v1259_v53 }
 0x30c   :  { %1213 = vmatprep.subr.bf16.mxu1 %v1265_v16 }
 0x30f   :  { %1214 = vmatpush3.bf16.msra.mxu1 %v1260_v49 }
 0x3c5   :  { %v1165_v18 = vpop.f32.mrb[16].mxu1 }
 0x3c6   :  { %v677_v19 = vadd.f32 %v1165_v18, %v959_v17  ;;  %v668_v20 = vpop.f32.mrb[17].mxu1  ;;  %v908_v18 = vlaneseq }
 0x3c7   :  { %v669_v21 = vadd.f32 %v959_v17, %v668_v20  ;;  %v1166_v22 = vpop.f32.mrb[18].mxu1 }
 0x3c8   :  { %v680_v23 = vadd.f32 %v1166_v22, %v959_v17  ;;  %v671_v24 = vpop.f32.mrb[19].mxu1  ;;  %v733_v26 = vmax.f32 %v677_v19, 0.0  ;;  %v909_v19 = vand.u32 127, %v908_v18 }
 0x3c9   :  { %v672_v25 = vadd.f32 %v959_v17, %v671_v24  ;;  %v731_v28 = vmax.f32 %v669_v21, 0.0 }
 0x3ca   :  { %v734_v27 = vmax.f32 %v680_v23, 0.0  ;;  %vm910_vm1 = vcmp.lt.s32.totalorder %v909_v19, 2 }
 0x3cb   :  { %v732_v29 = vmax.f32 %v672_v25, 0.0 }
 0x3cc   :  { %v749_v30 = vpack.c.bf16 %v734_v27, %v733_v26 }
 0x3cd   :  { %v748_v31 = vpack.c.bf16 %v732_v29, %v731_v28  ;;  %v1169_v32 = vpop.f32.mrb[20].mxu1 }
 0x3ce   :  { %v693_v33 = vadd.f32 %v1169_v32, %v959_v17  ;;  %v684_v34 = vpop.f32.mrb[21].mxu1 }
 0x3cf   :  { %v685_v35 = vadd.f32 %v959_v17, %v684_v34  ;;  %v1170_v36 = vpop.f32.mrb[22].mxu1  ;;  %1180 = vmatpush3.bf16.msra.mxu0 %v748_v31 }
 0x3d0   :  { %v696_v37 = vadd.f32 %v1170_v36, %v959_v17  ;;  %v687_v38 = vpop.f32.mrb[23].mxu1  ;;  %1181 = vmatprep.subr.bf16.mxu0 %v1265_v16  ;;  %v737_v40 = vmax.f32 %v693_v33, 0.0 }
 0x3d1   :  { %v688_v39 = vadd.f32 %v959_v17, %v687_v38  ;;  %v735_v42 = vmax.f32 %v685_v35, 0.0 }
 0x3d2   :  { %v738_v41 = vmax.f32 %v696_v37, 0.0 }
 0x3d3   :  { %v736_v43 = vmax.f32 %v688_v39, 0.0  ;;  %1182 = vmatpush3.bf16.msra.mxu0 %v749_v30 }
 0x3d4   :  { %v751_v44 = vpack.c.bf16 %v738_v41, %v737_v40  ;;  %1183 = vmatprep.subr.bf16.mxu0 %v1265_v16 }
 0x3d5   :  { %v750_v45 = vpack.c.bf16 %v736_v43, %v735_v42  ;;  %v1173_v46 = vpop.f32.mrb[24].mxu1 }
 0x3d6   :  { %v709_v54 = vadd.f32 %v1173_v46, %v959_v17  ;;  %v700_v55 = vpop.f32.mrb[25].mxu1 }
 0x3d7   :  { %v701_v57 = vadd.f32 %v959_v17, %v700_v55  ;;  %v1174_v58 = vpop.f32.mrb[26].mxu1  ;;  %1184 = vmatpush3.bf16.msra.mxu0 %v750_v45 }
 0x3d8   :  { %v712_v59 = vadd.f32 %v1174_v58, %v959_v17  ;;  %v703_v60 = vpop.f32.mrb[27].mxu1  ;;  %1185 = vmatprep.subr.bf16.mxu0 %v1265_v16  ;;  %v741_v62 = vmax.f32 %v709_v54, 0.0 }
 0x3d9   :  { %v704_v61 = vadd.f32 %v959_v17, %v703_v60  ;;  %v739_v0 = vmax.f32 %v701_v57, 0.0 }
 0x3da   :  { %v742_v63 = vmax.f32 %v712_v59, 0.0 }
 0x3db   :  { %v740_v56 = vmax.f32 %v704_v61, 0.0  ;;  %1186 = vmatpush3.bf16.msra.mxu0 %v751_v44 }
 0x3dc   :  { %v753_v1 = vpack.c.bf16 %v742_v63, %v741_v62  ;;  %1187 = vmatprep.subr.bf16.mxu0 %v1265_v16 }
 0x3dd   :  { %v752_v2 = vpack.c.bf16 %v740_v56, %v739_v0  ;;  %v1177_v3 = vpop.f32.mrb[28].mxu1 }
 0x3de   :  { %v725_v4 = vadd.f32 %v1177_v3, %v959_v17  ;;  %v716_v5 = vpop.f32.mrb[29].mxu1 }
 0x3df   :  { %v717_v6 = vadd.f32 %v959_v17, %v716_v5  ;;  %v1178_v7 = vpop.f32.mrb[30].mxu1  ;;  %1188 = vmatpush3.bf16.msra.mxu0 %v752_v2 }
 0x3e0   :  { %v728_v8 = vadd.f32 %v1178_v7, %v959_v17  ;;  %v719_v9 = vpop.f32.mrb[31].mxu1  ;;  %1189 = vmatprep.subr.bf16.mxu0 %v1265_v16  ;;  %v745_v11 = vmax.f32 %v725_v4, 0.0 }
 0x3e1   :  { %v720_v10 = vadd.f32 %v959_v17, %v719_v9  ;;  %v743_v13 = vmax.f32 %v717_v6, 0.0 }
 0x3e2   :  { %v746_v12 = vmax.f32 %v728_v8, 0.0 }
 0x3e3   :  { %v744_v14 = vmax.f32 %v720_v10, 0.0  ;;  %1190 = vmatpush3.bf16.msra.mxu0 %v753_v1 }
 0x3e4   :  { %v755_v15 = vpack.c.bf16 %v746_v12, %v745_v11  ;;  %1191 = vmatprep.subr.bf16.mxu0 %v1265_v16 }
 0x3e5   :  { %v754_v47 = vpack.c.bf16 %v744_v14, %v743_v13 }
 0x3e7   :  { %1192 = vmatpush3.bf16.msra.mxu0 %v754_v47 }
 0x3e8   :  { %1193 = vmatprep.subr.bf16.mxu0 %v1265_v16  ;;  %v960_v16 = vld [vmem:[%s1510_s8] ss:$0 sm:$0xff] }
 0x3eb   :  { %1194 = vmatpush3.bf16.msra.mxu0 %v755_v15 }
 0x3ee   :  { %1196 = vmatmul.mubr.bf16.vlgmr.msra.gmra.mrb[32].mxu0 %v747_v48 }
 0x4c1   :  { %v790_v50 = vpop.f32.mrb[32].mxu0 }
 0x4c2   :  { %v796_v51 = vpack.c.bf16 %v790_v50, %v790_v50  ;;  %v1197_v52 = vpop.f32.mrb[33].mxu0 }
 0x4c3   :  { %v793_v53 = vpop.f32.mrb[34].mxu0 }
 0x4c4   :  { %v1198_v17 = vpop.f32.mrb[35].mxu0  ;;  %1216 = vmatmul.mubr.bf16.vlgmr.msra.gmra.mrb[32].mxu1 %v796_v51 }
 0x597   :  { %v902_v20 = vpop.f32.mrb[32].mxu1 }
 0x598   :  { %v903_v21 = vadd.f32 %v960_v16, %v902_v20  ;;  %v1217_v22 = vpop.f32.mrb[33].mxu1 }
 0x599   :  { %v905_v23 = vpop.f32.mrb[34].mxu1 }
 0x59a   :  { %v1218_v24 = vpop.f32.mrb[35].mxu1  ;;  %v911_v25 = vsel %vm910_vm1, %v903_v21, -1e+30 }
 0x59b   :  { %912 = vmax.xlane.f32.xlu0 %v911_v25 }
 0x628   :  { %v913_v26 = vpop.xlane.xlu0 %912 }
 0x629   :  { %v914_v27 = vsub.f32 %v911_v25, %v913_v26 }
 0x62b   :  { %v915_v28 = vmul.f32 1.442695, %v914_v27 }
 0x62d   :  { %1261 = vpow2.f32 %v915_v28 }
 0x637   :  { %v1262_v29 = vpop.eup %1261 }
 0x638   :  { %917 = vadd.xlane.f32.xlu0 %v1262_v29 }
 0x6c5   :  { %v918_v30 = vpop.xlane.xlu0 %917 }
 0x6c6   :  { %1263 = vrcp.f32 %v918_v30 }
 0x6d0   :  { %v1264_v31 = vpop.eup %1263 }
 0x6d1   :  { %v920_v32 = vmul.f32 %v1264_v31, %v1262_v29 }
 0x6d3   :  { %921 = vst [vmem:[%s1511_s9] sm:$0xff] %v920_v32 }

</bundles_post_ra>
